<compile_context>
chip_gen: v7x
topology: tpu7x:2x2x1
jax: 0.10.0
libtpu: 0.0.40
codegen_flags: <defaults>
</compile_context>

<pallas_src>
import jax
import jax.numpy as jnp
import numpy as np
from jax.experimental import pallas as pl
from jax.experimental.pallas import tpu as pltpu


def _round_up(n, m):
    return ((n + m - 1) // m) * m


def _pad_cast(arr, shape, dtype):
    """Zero-pad `arr` up to `shape` and cast to `dtype`."""
    out = jnp.zeros(shape, dtype)
    return out.at[tuple(slice(0, s) for s in arr.shape)].set(arr.astype(dtype))


# ---------------------------------------------------------------------------
# Kernels
# ---------------------------------------------------------------------------
def _lora_mean_kernel(agent_ref, x_ref, w0t_ref, at_ref, bt_ref, bias_ref,
                      mean_ref):
    # agent_ref is the scalar-prefetch operand; it is only used in the index_maps.
    del agent_ref
    x = x_ref[...]                                                  # [TM, din] bf16
    base = jnp.dot(x, w0t_ref[...], preferred_element_type=jnp.float32)
    xa = jnp.dot(x, at_ref[0], preferred_element_type=jnp.float32)  # [TM, r]
    # scale = lora_alpha / r is already folded into bt.
    delta = jnp.dot(xa.astype(bt_ref.dtype), bt_ref[0],
                    preferred_element_type=jnp.float32)             # [TM, dout_pad]
    mean_ref[...] = (base + delta + bias_ref[...]).astype(mean_ref.dtype)


def _lora_std_kernel(agent_ref, lsw0_ref, lsat_ref, lsbt_ref, std_ref):
    del agent_ref
    ls_delta = jnp.dot(lsat_ref[0], lsbt_ref[0],
                       preferred_element_type=jnp.float32)          # [1, dout_pad]
    std_ref[...] = jnp.exp(lsw0_ref[...] + ls_delta).astype(std_ref.dtype)


# ---------------------------------------------------------------------------
# One-time parameter glue (cache the result across forward calls)
# ---------------------------------------------------------------------------
def prepare_lora_gaussian_params(w0, bias, lora_a, lora_b, ls_w0, ls_a, ls_b,
                                 *, lora_alpha, r):
    dout, din = w0.shape
    num_agents = lora_a.shape[0]
    scale = float(lora_alpha) / float(r)
    dout_pad = _round_up(dout, 128)   # lane-dense output stores

    # TODO(synk): if the weights are static across many calls per agent, W_eff =
    # W0 + scale*B@A could be pre-fused per agent, removing the K=r MXU-starved dot.
    params = dict(
        # mean path (bf16 matmul operands, f32 epilogue)
        w0t=_pad_cast(w0.T, (din, dout_pad), jnp.bfloat16),                       # [din, dout_pad]
        at_all=jnp.transpose(lora_a, (0, 2, 1)).astype(jnp.bfloat16),             # [A, din, r]
        bt_all=_pad_cast(scale * jnp.transpose(lora_b, (0, 2, 1)),
                         (num_agents, r, dout_pad), jnp.bfloat16),                # [A, r, dout_pad]
        bias=_pad_cast(bias.reshape(1, dout), (1, dout_pad), jnp.float32),
        # logstd path (tiny; kept f32 end-to-end)
        lsw0=_pad_cast(ls_w0.reshape(1, dout), (1, dout_pad), jnp.float32),
        lsat_all=jnp.transpose(ls_a, (0, 2, 1)).astype(jnp.float32),              # [A, 1, r]
        lsbt_all=_pad_cast(scale * jnp.transpose(ls_b, (0, 2, 1)),
                           (num_agents, r, dout_pad), jnp.float32),               # [A, r, dout_pad]
    )
    meta = dict(din=din, dout=dout, dout_pad=dout_pad, r=r, num_agents=num_agents)
    return params, meta


# ---------------------------------------------------------------------------
# Forward
# ---------------------------------------------------------------------------
def lora_diag_gaussian(x, params, meta, agent_id, *, block_m=256):
    """Returns (action_mean, action_std) of the FixedNormal for one agent."""
    N, din = x.shape
    assert din == meta["din"]
    dout, dout_pad, r = meta["dout"], meta["dout_pad"], meta["r"]

    tm = min(block_m, _round_up(N, 8))
    n_pad = _round_up(N, tm)
    x_p = _pad_cast(x, (n_pad, din), jnp.bfloat16)
    agent = jnp.asarray(agent_id, jnp.int32).reshape(1)

    grid_m = n_pad // tm
    mean_p = pl.pallas_call(
        _lora_mean_kernel,
        out_shape=jax.ShapeDtypeStruct((n_pad, dout_pad), jnp.float32),
        grid_spec=pltpu.PrefetchScalarGridSpec(
            num_scalar_prefetch=1,
            grid=(grid_m,),
            in_specs=[
                pl.BlockSpec((tm, din), lambda i, aid: (i, 0)),               # x tile
                pl.BlockSpec((din, dout_pad), lambda i, aid: (0, 0)),         # W0^T (resident)
                pl.BlockSpec((1, din, r), lambda i, aid: (aid[0], 0, 0)),     # A_a^T
                pl.BlockSpec((1, r, dout_pad), lambda i, aid: (aid[0], 0, 0)),  # scale*B_a^T
                pl.BlockSpec((1, dout_pad), lambda i, aid: (0, 0)),           # bias
            ],
            out_specs=pl.BlockSpec((tm, dout_pad), lambda i, aid: (i, 0)),
        ),
        compiler_params=pltpu.CompilerParams(
            dimension_semantics=("parallel",),      # megacore batch split on v7x
            vmem_limit_bytes=32 * 1024 * 1024),     # safe on v5e/v6e/v7x; tiles sized to fit
    )(agent, x_p, params["w0t"], params["at_all"], params["bt_all"], params["bias"])

    # std path: independent of x -> single [1, dout_pad] row, broadcast outside.
    std_row = pl.pallas_call(
        _lora_std_kernel,
        out_shape=jax.ShapeDtypeStruct((1, dout_pad), jnp.float32),
        grid_spec=pltpu.PrefetchScalarGridSpec(
            num_scalar_prefetch=1,
            grid=(1,),
            in_specs=[
                pl.BlockSpec((1, dout_pad), lambda i, aid: (0, 0)),
                pl.BlockSpec((1, 1, r), lambda i, aid: (aid[0], 0, 0)),
                pl.BlockSpec((1, r, dout_pad), lambda i, aid: (aid[0], 0, 0)),
            ],
            out_specs=pl.BlockSpec((1, dout_pad), lambda i, aid: (0, 0)),
        ),
        compiler_params=pltpu.CompilerParams(
            dimension_semantics=("arbitrary",)),
    )(agent, params["lsw0"], params["lsat_all"], params["lsbt_all"])

    mean = mean_p[:N, :dout]
    std = jnp.broadcast_to(std_row[:, :dout], (N, dout))
    return mean, std


# ---------------------------------------------------------------------------
# Pure-JAX reference (module semantics, f32)
# ---------------------------------------------------------------------------
def _reference(x, w0, bias, lora_a, lora_b, ls_w0, ls_a, ls_b,
               *, lora_alpha, r, agent_id):
    scale = float(lora_alpha) / float(r)
    dw = scale * (lora_b[agent_id] @ lora_a[agent_id])       # [dout, din]
    mean = x @ (w0 + dw).T + bias[None, :]
    ls_dw = scale * (ls_b[agent_id] @ ls_a[agent_id])        # [dout, 1]
    logstd = (ls_w0[:, None] + ls_dw).T                      # [1, dout]
    std = jnp.exp(jnp.broadcast_to(logstd, mean.shape))
    return mean, std


if __name__ == "__main__":
    # Small shapes consistent with the module's linear-on-[batch, features] forward.
    N = 8            # batch
    num_inputs = 32
    num_outputs = 16
    r = 4
    num_agents = 3
    lora_alpha = 1
    gain = 0.01
    log_std_init = 0.0
    agent_id = 1

    key = jax.random.PRNGKey(0)
    k = jax.random.split(key, 6)

    # fc_mean (MA_Linear) parameters: W0 [out, in] (small-gain init), bias zeros.
    w0 = gain * jax.random.normal(k[0], (num_outputs, num_inputs), jnp.float32)
    bias = jnp.zeros((num_outputs,), jnp.float32)
    # Per-agent LoRA factors (nonzero B so the delta path is exercised).
    lora_a = 0.1 * jax.random.normal(k[1], (num_agents, r, num_inputs), jnp.float32)
    lora_b = 0.1 * jax.random.normal(k[2], (num_agents, num_outputs, r), jnp.float32)

    # logstd = LoRA_AddBias(ones(num_outputs) * log_std_init, ...)
    ls_w0 = jnp.ones((num_outputs,), jnp.float32) * log_std_init
    ls_a = 0.1 * jax.random.normal(k[3], (num_agents, r, 1), jnp.float32)
    ls_b = 0.1 * jax.random.normal(k[4], (num_agents, num_outputs, r), jnp.float32)

    x = jax.random.normal(k[5], (N, num_inputs), jnp.float32)

    params, meta = prepare_lora_gaussian_params(
        w0, bias, lora_a, lora_b, ls_w0, ls_a, ls_b, lora_alpha=lora_alpha, r=r)

    mean, std = lora_diag_gaussian(x, params, meta, agent_id)
    jax.block_until_ready((mean, std))

    ref_mean, ref_std = _reference(
        x, w0, bias, lora_a, lora_b, ls_w0, ls_a, ls_b,
        lora_alpha=lora_alpha, r=r, agent_id=agent_id)

    # Mean path runs bf16 MXU operands -> compare with bf16-level tolerance.
    np.testing.assert_allclose(np.asarray(mean), np.asarray(ref_mean),
                               rtol=2e-2, atol=5e-3)
    # Std path is f32 end-to-end.
    np.testing.assert_allclose(np.asarray(std), np.asarray(ref_std),
                               rtol=1e-3, atol=1e-4)

    # TODO(synk): the torch module returns a FixedNormal distribution object
    # (sampling/log_prob); here we return its defining (mean, std) tensors.
    print("KERNEL_OK")
</pallas_src>

<mosaic_0001>
module attributes {stable_mosaic.version = 11 : i64} {
  func.func @_lora_mean_kernel(%arg0: i32, %arg1: memref<1xi32, #tpu.memory_space<smem>>, %arg2: memref<8x32xbf16, #tpu.memory_space<vmem>>, %arg3: memref<32x128xbf16, #tpu.memory_space<vmem>>, %arg4: memref<1x32x4xbf16, #tpu.memory_space<vmem>>, %arg5: memref<1x4x128xbf16, #tpu.memory_space<vmem>>, %arg6: memref<1x128xf32, #tpu.memory_space<vmem>>, %arg7: memref<8x128xf32, #tpu.memory_space<vmem>>) attributes {dimension_semantics = [#tpu.dimension_semantics<parallel>], iteration_bounds = array<i64: 1>, scalar_prefetch = 1 : i64, scratch_operands = 0 : i64, tpu.core_type = #tpu.core_type<tc>, window_params = [{transform_indices = @transform_0, window_bounds = array<i64: 8, 32>}, {pipeline_mode = #tpu.pipeline_mode<synchronous>, transform_indices = @transform_1, window_bounds = array<i64: 32, 128>}, {transform_indices = @transform_2, window_bounds = array<i64: 1, 32, 4>}, {transform_indices = @transform_3, window_bounds = array<i64: 1, 4, 128>}, {pipeline_mode = #tpu.pipeline_mode<synchronous>, transform_indices = @transform_4, window_bounds = array<i64: 1, 128>}, {transform_indices = @transform_5, window_bounds = array<i64: 8, 128>}]} {
    %c0 = arith.constant 0 : index
    %c0_0 = arith.constant 0 : index
    %0 = vector.load %arg2[%c0, %c0_0] : memref<8x32xbf16, #tpu.memory_space<vmem>>, vector<8x32xbf16>
    %c0_1 = arith.constant 0 : index
    %c0_2 = arith.constant 0 : index
    %1 = vector.load %arg3[%c0_1, %c0_2] : memref<32x128xbf16, #tpu.memory_space<vmem>>, vector<32x128xbf16>
    %cst = arith.constant dense<0.000000e+00> : vector<8x128xf32>
    %2 = tpu.matmul %0, %1, %cst {dimension_numbers = #tpu.dot_dimension_numbers<[1], [0], [0], [1], [0, 0, 1, 1], [], []>} : vector<8x32xbf16>, vector<32x128xbf16>, vector<8x128xf32> -> vector<8x128xf32>
    %c0_3 = arith.constant 0 : index
    %c0_4 = arith.constant 0 : index
    %c0_5 = arith.constant 0 : index
    %3 = vector.load %arg4[%c0_3, %c0_4, %c0_5] : memref<1x32x4xbf16, #tpu.memory_space<vmem>>, vector<1x32x4xbf16>
    %4 = vector.shape_cast %3 : vector<1x32x4xbf16> to vector<32x4xbf16>
    %cst_6 = arith.constant dense<0.000000e+00> : vector<8x4xf32>
    %5 = tpu.matmul %0, %4, %cst_6 {dimension_numbers = #tpu.dot_dimension_numbers<[1], [0], [0], [1], [0, 0, 1, 1], [], []>} : vector<8x32xbf16>, vector<32x4xbf16>, vector<8x4xf32> -> vector<8x4xf32>
    %6 = arith.truncf %5 : vector<8x4xf32> to vector<8x4xbf16>
    %c0_7 = arith.constant 0 : index
    %c0_8 = arith.constant 0 : index
    %c0_9 = arith.constant 0 : index
    %7 = vector.load %arg5[%c0_7, %c0_8, %c0_9] : memref<1x4x128xbf16, #tpu.memory_space<vmem>>, vector<1x4x128xbf16>
    %8 = vector.shape_cast %7 : vector<1x4x128xbf16> to vector<4x128xbf16>
    %cst_10 = arith.constant dense<0.000000e+00> : vector<8x128xf32>
    %9 = tpu.matmul %6, %8, %cst_10 {dimension_numbers = #tpu.dot_dimension_numbers<[1], [0], [0], [1], [0, 0, 1, 1], [], []>} : vector<8x4xbf16>, vector<4x128xbf16>, vector<8x128xf32> -> vector<8x128xf32>
    %10 = arith.addf %2, %9 : vector<8x128xf32>
    %c0_11 = arith.constant 0 : index
    %c0_12 = arith.constant 0 : index
    %11 = vector.load %arg6[%c0_11, %c0_12] : memref<1x128xf32, #tpu.memory_space<vmem>>, vector<1x128xf32>
    %12 = vector.broadcast %11 : vector<1x128xf32> to vector<8x128xf32>
    %13 = arith.addf %10, %12 : vector<8x128xf32>
    %c0_13 = arith.constant 0 : index
    %c0_14 = arith.constant 0 : index
    %14 = vector.load %arg7[%c0_13, %c0_14] : memref<8x128xf32, #tpu.memory_space<vmem>>, vector<8x128xf32>
    tpu.vector_store %arg7[%c0_13, %c0_14], %13 {strides = array<i32>} : memref<8x128xf32, #tpu.memory_space<vmem>>, vector<8x128xf32>,
    return
  }
  func.func @transform_0(%arg0: i32, %arg1: memref<1xi32, #tpu.memory_space<smem>>) -> (i32, i32) {
    %c0_i32 = arith.constant 0 : i32
    %c0_i32_0 = arith.constant 0 : i32
    return %arg0, %c0_i32 : i32, i32
  }
  func.func @transform_1(%arg0: i32, %arg1: memref<1xi32, #tpu.memory_space<smem>>) -> (i32, i32) {
    %c0_i32 = arith.constant 0 : i32
    %c0_i32_0 = arith.constant 0 : i32
    %c0_i32_1 = arith.constant 0 : i32
    return %c0_i32, %c0_i32_0 : i32, i32
  }
  func.func @transform_2(%arg0: i32, %arg1: memref<1xi32, #tpu.memory_space<smem>>) -> (i32, i32, i32) {
    %c0 = arith.constant 0 : index
    %0 = memref.load %arg1[%c0] : memref<1xi32, #tpu.memory_space<smem>>
    %c0_i32 = arith.constant 0 : i32
    %c0_i32_0 = arith.constant 0 : i32
    %c0_i32_1 = arith.constant 0 : i32
    return %0, %c0_i32, %c0_i32_0 : i32, i32, i32
  }
  func.func @transform_3(%arg0: i32, %arg1: memref<1xi32, #tpu.memory_space<smem>>) -> (i32, i32, i32) {
    %c0 = arith.constant 0 : index
    %0 = memref.load %arg1[%c0] : memref<1xi32, #tpu.memory_space<smem>>
    %c0_i32 = arith.constant 0 : i32
    %c0_i32_0 = arith.constant 0 : i32
    %c0_i32_1 = arith.constant 0 : i32
    return %0, %c0_i32, %c0_i32_0 : i32, i32, i32
  }
  func.func @transform_4(%arg0: i32, %arg1: memref<1xi32, #tpu.memory_space<smem>>) -> (i32, i32) {
    %c0_i32 = arith.constant 0 : i32
    %c0_i32_0 = arith.constant 0 : i32
    %c0_i32_1 = arith.constant 0 : i32
    return %c0_i32, %c0_i32_0 : i32, i32
  }
  func.func @transform_5(%arg0: i32, %arg1: memref<1xi32, #tpu.memory_space<smem>>) -> (i32, i32) {
    %c0_i32 = arith.constant 0 : i32
    %c0_i32_0 = arith.constant 0 : i32
    return %arg0, %c0_i32 : i32, i32
  }
}

</mosaic_0001>

<bundles_post_ra>
// kernel: tpu_custom_call.1
= control target key start
LH: loop header
LB: loop body
LE: loop exit
PB: predicated region body
PF: predicated region fallthrough
CT: control target
= control target key end

     0   :  { %v336_v0 = vmov 0.0   ;;  %vm337_vm0 = vmmov 0   ;;  %s413_s0 = inlined_call_operand.<no memory space> [shape: s32[1], index: 0, kind: input, shape index: {}]   ;;  %s414_s1 = inlined_call_operand.vmem [shape: bf16[8,32], index: 1, kind: input, shape index: {}]   ;;  %s415_s2 = inlined_call_operand.vmem [shape: bf16[32,128], index: 2, kind: input, shape index: {}]   ;;  %s416_s3 = inlined_call_operand.vmem [shape: bf16[3,32,4], index: 3, kind: input, shape index: {}]   ;;  %s417_s4 = inlined_call_operand.vmem [shape: bf16[3,4,128], index: 4, kind: input, shape index: {}]   ;;  %s418_s5 = inlined_call_operand.vmem [shape: f32[1,128], index: 5, kind: input, shape index: {}]   ;;  %s419_s6 = inlined_call_operand.hbm [shape: f32[8,128], index: 6, kind: output, shape index: {}]  }
   0x1   :  { %p48_p0 = scmp.lt.s32.totalorder %s413_s0, 2  ;;  %283 = vmatprep.subr.bf16.mxu0 %v336_v0  ;;  %287 = vmatprep.mubr.msk.bf16.mxu0 %vm337_vm0, %v336_v0 }
   0x2   :  { %291 = vmatprep.subr.bf16.mxu1 %v336_v0  ;;  %293 = vmatprep.mubr.msk.bf16.mxu1 %vm337_vm0, %v336_v0 }
   0x3   :  { %s421_s0 = smov (!%p48_p0, %s413_s0), 2 }
   0x4   :  { %12 = vsyncpa [#allocation5], 0  ;;  %s274_s25 = sshll.u32 %s421_s0, 4  ;;  %s265_s26 = sshll.u32 %s421_s0, 1  ;;  %vm132_vm1 = vcmask 1041408   ;;  %vm82_vm2 = vcmask 261120  }
   0x5   :  { %s52_s29 = scalar_lea.vmem %s416_s3, %s274_s25  ;;  %s58_s8 = scalar_lea.vmem %s417_s4, %s265_s26  ;;  %v61_v5 = vld [vmem:[%s414_s1] sm:$0xf]  ;;  %vm128_vm3 = vcmask 31744   ;;  %v311_v12 = vld [vmem:[%s415_s2 + $0x8] sm:$0xff]  }
   0x6   :  { %v308_v1 = vld [vmem:[%s52_s29] sm:$0xff]   ;;  %v309_v2 = vld [vmem:[%s52_s29 + $0x8] sm:$0xff]   ;;  %s338_s13 = smov [#allocation4]  }
   0x7   :  { %284 = vmatpush3.bf16.msra.mxu0 %v308_v1  ;;  %v127_v3 = vld [vmem:[%s58_s8] sm:$0x3]  ;;  %s243_s14 = sshll.u32 %s338_s13, 4  ;;  %s244_s14 = int_to_ptr.vmem [resolvable:$true] %s243_s14 }
   0x8   :  { %285 = vmatprep.subr.bf16.mxu0 %v336_v0  ;;  %v134_v4 = vsel %vm132_vm1, %v127_v3, 0  ;;  %v310_v7 = vld [vmem:[%s415_s2] sm:$0xff]   ;;  %s312_s2 = scalar_lea.vmem %s244_s14, 128  ;;  %p317_p2 = scmp.lt.s32.totalorder %s244_s14, %s244_s14 }
   0x9   :  { %292 = vmatpush3.bf16.msra.mxu1 %v134_v4  ;;  %v273_v18 = vld [vmem:[%s418_s5] ss:$0 sm:$0xff]  ;;  %p313_p1 = scmp.ne.s32.totalorder %s244_s14, %s312_s2  ;;  %p318_p3 = scmp.lt.s32.totalorder %s312_s2, %s312_s2 }
   0xa   :  { %297 = vmatprep.subr.bf16.mxu1 %v336_v0 }
   0xb   :  { %286 = vmatpush3.bf16.msra.mxu0 %v309_v2  ;;  %p319_p4 = por %p318_p3, %p317_p2 }
   0xd   :  { %p320_p5 = pnand %p319_p4, %p313_p1 }
   0xe   :  { %288 = vmatmul.mubr.msk.bf16.vlgmr.msra.gmra.mrb[0].mxu0 %vm82_vm2, %v61_v5 }
  0xe1   :  { %v120_v6 = vpop.f32.mrb[0].mxu0 }
  0xe2   :  { %v126_v8 = vpack.c.bf16 %v120_v6, %v120_v6  ;;  %v289_v9 = vpop.f32.mrb[1].mxu0 }
  0xe3   :  { %v123_v10 = vpop.f32.mrb[2].mxu0 }
  0xe4   :  { %v290_v11 = vpop.f32.mrb[3].mxu0  ;;  %294 = vmatmul.mubr.msk.bf16.vlgmr.msra.gmra.mrb[0].mxu1 %vm128_vm3, %v126_v8 }
  0xe5   :  { %298 = vmatpush3.bf16.msra.mxu1 %v310_v7  ;;  %301 = vmatprep.mubr.msk.bf16.mxu1 %vm337_vm0, %v336_v0 }
  0xe6   :  { %299 = vmatprep.subr.bf16.mxu1 %v336_v0 }
  0xe9   :  { %300 = vmatpush3.bf16.msra.mxu1 %v311_v12 }
  0xec   :  { %302 = vmatmul.mubr.msk.bf16.vlgmr.msra.gmra.mrb[4].mxu1 %vm82_vm2, %v61_v5 }
 0x1b7   :  { %v170_v13 = vpop.f32.mrb[0].mxu1 }
 0x1b8   :  { %v295_v14 = vpop.f32.mrb[1].mxu1 }
 0x1b9   :  { %v173_v15 = vpop.f32.mrb[2].mxu1 }
 0x1ba   :  { %v296_v16 = vpop.f32.mrb[3].mxu1 }
 0x1bf   :  { %v222_v17 = vpop.f32.mrb[4].mxu1 }
 0x1c0   :  { %v223_v19 = vadd.f32 %v222_v17, %v170_v13  ;;  %v303_v20 = vpop.f32.mrb[5].mxu1 }
 0x1c1   :  { %v225_v21 = vpop.f32.mrb[6].mxu1 }
 0x1c2   :  { %v304_v22 = vpop.f32.mrb[7].mxu1  ;;  %v235_v23 = vadd.f32 %v273_v18, %v223_v19 }
 0x1c4   :  { %236 = vst [vmem:[#allocation4] sm:$0xff] %v235_v23 }
 0x1c5   :  { %323 = shalt.err (!%p320_p5)
}
 0x1c6   :  { %s324_s5 = scalar_lea.hbm %s419_s6, 128 }
 0x1c7   :  { %p325_p6 = scmp.ne.s32.totalorder %s419_s6, %s324_s5  ;;  %p328_p7 = scmp.lt.u32.totalorder %s324_s5, %s419_s6 }
 0x1c9   :  { %p330_p8 = pnand %p328_p7, %p325_p6 }
 0x1cb   :  { %333 = shalt.err (!%p330_p8)
}
 0x1cc   :  { %246 = dma.vmem_to_hbm [thread:$0]  %s244_s14, 128, %s419_s6, [#allocation5]  }
 0x1cd   :  { %334 = dma.done.wait [#allocation5], 128  }
 0x1ce   :  { %335 = vsyncadd [#allocation5], 4294967168 }
 0x1cf   :  { %250 = vsyncpa [#allocation5], 1 }

</bundles_post_ra>
